<compile_context>
chip_gen: v7x
topology: tpu7x:2x2x1
jax: 0.10.0
libtpu: 0.0.40
codegen_flags: <defaults>
</compile_context>

<pallas_src>
import jax
import jax.numpy as jnp
from jax.experimental import pallas as pl
from jax.experimental.pallas import tpu as pltpu

BN_EPS = 1e-5


# ----------------------------------------------------------------------------
# Pallas kernel
# ----------------------------------------------------------------------------
def _make_upscale_kernel(tile_rows: int, W: int):
    THW = tile_rows * W

    def kernel(x_ref, w_ref, b_ref, o_ref):
        # x_ref: [(TH+1)*W, 2*Cin] bf16  row tile of dx-packed input + 1 halo row
        # w_ref: [2, 2*Cin, 4*Cout] bf16 dy-slab packed weights, BN scale folded
        # b_ref: [1, 4*Cout]        f32  folded conv-bias + BN bias (phase tiled)
        # o_ref: [TH*W, 4*Cout]          lane-dense output tile
        acc = jnp.dot(x_ref[pl.ds(0, THW), :], w_ref[0],
                      preferred_element_type=jnp.float32)
        acc += jnp.dot(x_ref[pl.ds(W, THW), :], w_ref[1],
                       preferred_element_type=jnp.float32)
        o_ref[...] = jnp.maximum(acc + b_ref[...], 0.0).astype(o_ref.dtype)

    return kernel


# ----------------------------------------------------------------------------
# Weight packing: ConvTranspose2d(3x3, stride 2) -> phase-decomposed matmul
# ----------------------------------------------------------------------------
def _pack_weights(w_hwio, scale):
    """[3, 3, Cin, Cout] + per-Cout BN scale -> [2, 2*Cin, 4*Cout] bf16.

    Axis 0 is the dy tap (input row m / m+1).  K rows are dx-major (dx=0 taps,
    then dx=1 taps) to match the wrapper's dx pre-pack.  Columns are ordered
    output-phase (py, px) major, cout minor:
        out[2m+py, 2n+px] = sum_{dy,dx} x[m+dy, n+dx] @ (W[ky, kx] * scale)
    with ky = py + 1 - 2*dy, kx = px + 1 - 2*dx (zero block when out of range).
    """
    kh, kw, cin, cout = w_hwio.shape
    w = (w_hwio * scale).astype(jnp.float32)     # fold BN scale pre-cast
    slabs = []
    for dy in (0, 1):
        dx_rows = []
        for dx in (0, 1):
            cols = []
            for py in (0, 1):
                for px in (0, 1):
                    ky, kx = py + 1 - 2 * dy, px + 1 - 2 * dx
                    if 0 <= ky < kh and 0 <= kx < kw:
                        cols.append(w[ky, kx])
                    else:
                        cols.append(jnp.zeros((cin, cout), w.dtype))
            dx_rows.append(jnp.concatenate(cols, axis=1))    # [Cin, 4*Cout]
        slabs.append(jnp.concatenate(dx_rows, axis=0))        # [2*Cin, 4*Cout]
    return jnp.stack(slabs, axis=0).astype(jnp.bfloat16)      # [2, 2*Cin, 4*Cout]


# ----------------------------------------------------------------------------
# Row-tile selection: budget double-buffered blocks for v7x's 64 MiB VMEM/TC
# ----------------------------------------------------------------------------
def _pick_tile_rows(H, W, Cin, Cout, budget_bytes=8 * 1024 * 1024):
    candidates = [t for t in range(1, H + 1) if H % t == 0 and (t * W) % 8 == 0]
    if not candidates:
        return H

    def fits(t):
        x_b = (t + 1) * W * (2 * Cin) * 2      # bf16 input block (with halo)
        o_b = t * W * (4 * Cout) * 4           # f32 output block
        return 2 * (x_b + o_b) <= budget_bytes  # double-buffered

    good = [t for t in candidates if fits(t) and (H // t) >= 2]
    if good:
        return max(good)
    good = [t for t in candidates if fits(t)]
    return max(good) if good else min(candidates)


# ----------------------------------------------------------------------------
# Forward wrapper (NCHW in, NCHW out — like the PyTorch module)
# ----------------------------------------------------------------------------
def upscale_twice_forward(params, x_nchw, *, out_dtype=jnp.float32):
    w_hwio = params["weight"]        # [3, 3, Cin, Cout]
    conv_b = params["conv_bias"]     # [Cout]
    gamma, beta, mean, var = params["bn"]

    B, Cin, H, W = x_nchw.shape
    Cout = w_hwio.shape[3]
    HW, K, N = H * W, 2 * Cin, 4 * Cout

    # Fold conv bias + BatchNorm (running stats): scale goes into the weights,
    # only the bias survives into the kernel epilogue.
    scale = gamma * jax.lax.rsqrt(var + BN_EPS)
    bias = beta + scale * (conv_b - mean)
    bvec = jnp.tile(bias, 4).reshape(1, N).astype(jnp.float32)
    wmat = _pack_weights(w_hwio, scale)

    TH = _pick_tile_rows(H, W, Cin, Cout)
    nT = H // TH
    THW = TH * W

    # Input prep (one fused XLA pass over x): NCHW -> NHWC bf16, dx pre-pack
    # (right neighbour, zero at n = W-1), one zero halo row at the bottom, then
    # per-tile slabs with the halo row duplicated so BlockSpecs tile without
    # overlap (the duplication is one row per tile — negligible HBM).
    x = jnp.transpose(x_nchw, (0, 2, 3, 1)).astype(jnp.bfloat16)        # [B,H,W,Cin]
    x_r = jnp.pad(x[:, :, 1:, :], ((0, 0), (0, 0), (0, 1), (0, 0)))     # dx=1 tap
    x2 = jnp.concatenate([x, x_r], axis=-1)                             # [B,H,W,K]
    x2 = jnp.pad(x2, ((0, 0), (0, 1), (0, 0), (0, 0)))                  # [B,H+1,W,K]
    body = x2[:, :H].reshape(B, nT, TH, W, K)
    halo = x2[:, TH:H + 1:TH][:, :, None]                               # [B,nT,1,W,K]
    x_tiles = jnp.concatenate([body, halo], axis=2).reshape(B, nT, (TH + 1) * W, K)

    cost = pl.CostEstimate(
        flops=2 * 2 * B * HW * K * N + 2 * B * HW * N,
        transcendentals=0,
        bytes_accessed=(x_tiles.size * 2 + wmat.size * 2 + bvec.size * 4
                        + B * HW * N * jnp.dtype(out_dtype).itemsize),
    )

    out = pl.pallas_call(
        _make_upscale_kernel(TH, W),
        out_shape=jax.ShapeDtypeStruct((B, HW, N), out_dtype),
        grid=(B, nT),
        in_specs=[
            pl.BlockSpec((None, None, (TH + 1) * W, K), lambda b, t: (b, t, 0, 0)),
            pl.BlockSpec((2, K, N), lambda b, t: (0, 0, 0)),   # VMEM-resident
            pl.BlockSpec((1, N), lambda b, t: (0, 0)),         # VMEM-resident
        ],
        out_specs=pl.BlockSpec((None, THW, N), lambda b, t: (b, t, 0)),
        compiler_params=pltpu.CompilerParams(
            dimension_semantics=("parallel", "parallel"),
            vmem_limit_bytes=32 * 1024 * 1024,
        ),
        cost_estimate=cost,
    )(x_tiles, wmat, bvec)

    # Depth-to-space + NCHW in one transpose:
    # [B, m, n, py, px, co] -> [B, co, m, py, n, px] -> [B, Cout, 2H, 2W]
    out = out.reshape(B, H, W, 2, 2, Cout).transpose(0, 5, 1, 3, 2, 4)
    return out.reshape(B, Cout, 2 * H, 2 * W).astype(jnp.float32)


# ----------------------------------------------------------------------------
# Pure-JAX reference (independent formulation: dilated conv with flipped taps)
# ----------------------------------------------------------------------------
def upscale_twice_reference(params, x_nchw):
    w_hwio = params["weight"]
    conv_b = params["conv_bias"]
    gamma, beta, mean, var = params["bn"]
    scale = gamma * jax.lax.rsqrt(var + BN_EPS)
    bias = beta + scale * (conv_b - mean)

    # Same operand rounding as the kernel (bf16 x, bf16 scale-folded weights),
    # but an independent formulation of the transposed conv.
    w = (w_hwio * scale).astype(jnp.bfloat16).astype(jnp.float32)
    x = jnp.transpose(x_nchw, (0, 2, 3, 1)).astype(jnp.bfloat16).astype(jnp.float32)
    conv = jax.lax.conv_general_dilated(
        x, w[::-1, ::-1, :, :],
        window_strides=(1, 1), padding=((1, 2), (1, 2)), lhs_dilation=(2, 2),
        dimension_numbers=("NHWC", "HWIO", "NHWC"),
        precision=jax.lax.Precision.HIGHEST)
    y = jnp.maximum(conv + bias, 0.0)
    return jnp.transpose(y, (0, 3, 1, 2))


if __name__ == "__main__":
    B, Cin, Cout, H, W = 2, 64, 32, 16, 16
    key = jax.random.PRNGKey(0)
    kw, kb, kg, kbe, km, kv, kx = jax.random.split(key, 7)
    params = {
        # PyTorch ConvTranspose2d weight is [Cin, Cout, kH, kW]; stored here as
        # [kH, kW, Cin, Cout] (pure permutation).
        "weight": 0.1 * jax.random.normal(kw, (3, 3, Cin, Cout), jnp.float32),
        "conv_bias": 0.1 * jax.random.normal(kb, (Cout,), jnp.float32),
        "bn": (1.0 + 0.1 * jax.random.normal(kg, (Cout,), jnp.float32),   # gamma
               0.1 * jax.random.normal(kbe, (Cout,), jnp.float32),        # beta
               0.1 * jax.random.normal(km, (Cout,), jnp.float32),         # running mean
               0.5 + jax.random.uniform(kv, (Cout,), jnp.float32)),       # running var
    }
    x = jax.random.normal(kx, (B, Cin, H, W), jnp.float32)

    fwd = jax.jit(upscale_twice_forward)
    y = jax.block_until_ready(fwd(params, x))

    assert y.shape == (B, Cout, 2 * H, 2 * W), y.shape
    assert y.dtype == jnp.float32

    ref = upscale_twice_reference(params, x)
    err = float(jnp.max(jnp.abs(y - ref)))
    assert err < 2e-3, f"max abs error vs reference: {err}"
    print("KERNEL_OK")
</pallas_src>

<mosaic_0001>
module attributes {stable_mosaic.version = 11 : i64} {
  func.func @kernel(%arg0: i32, %arg1: i32, %arg2: memref<1x1x144x128xbf16, #tpu.memory_space<vmem>>, %arg3: memref<2x128x128xbf16, #tpu.memory_space<vmem>>, %arg4: memref<1x128xf32, #tpu.memory_space<vmem>>, %arg5: memref<1x128x128xf32, #tpu.memory_space<vmem>>) attributes {dimension_semantics = [#tpu.dimension_semantics<parallel>, #tpu.dimension_semantics<parallel>], iteration_bounds = array<i64: 2, 2>, scalar_prefetch = 0 : i64, scratch_operands = 0 : i64, tpu.core_type = #tpu.core_type<tc>, window_params = [{transform_indices = @transform_0, window_bounds = array<i64: 1, 1, 144, 128>}, {pipeline_mode = #tpu.pipeline_mode<synchronous>, transform_indices = @transform_1, window_bounds = array<i64: 2, 128, 128>}, {pipeline_mode = #tpu.pipeline_mode<synchronous>, transform_indices = @transform_2, window_bounds = array<i64: 1, 128>}, {transform_indices = @transform_3, window_bounds = array<i64: 1, 128, 128>}]} {
    %c0 = arith.constant 0 : index
    %c0_0 = arith.constant 0 : index
    %c0_1 = arith.constant 0 : index
    %c0_2 = arith.constant 0 : index
    %0 = vector.load %arg2[%c0, %c0_0, %c0_1, %c0_2] : memref<1x1x144x128xbf16, #tpu.memory_space<vmem>>, vector<1x1x128x128xbf16>
    %1 = vector.shape_cast %0 : vector<1x1x128x128xbf16> to vector<128x128xbf16>
    %c0_3 = arith.constant 0 : index
    %c0_4 = arith.constant 0 : index
    %c0_5 = arith.constant 0 : index
    %2 = vector.load %arg3[%c0_3, %c0_4, %c0_5] : memref<2x128x128xbf16, #tpu.memory_space<vmem>>, vector<1x128x128xbf16>
    %3 = vector.shape_cast %2 : vector<1x128x128xbf16> to vector<128x128xbf16>
    %cst = arith.constant dense<0.000000e+00> : vector<128x128xf32>
    %4 = tpu.matmul %1, %3, %cst {dimension_numbers = #tpu.dot_dimension_numbers<[1], [0], [0], [1], [0, 0, 1, 1], [], []>} : vector<128x128xbf16>, vector<128x128xbf16>, vector<128x128xf32> -> vector<128x128xf32>
    %c0_6 = arith.constant 0 : index
    %c0_7 = arith.constant 0 : index
    %c16 = arith.constant 16 : index
    %c0_8 = arith.constant 0 : index
    %5 = vector.load %arg2[%c0_6, %c0_7, %c16, %c0_8] : memref<1x1x144x128xbf16, #tpu.memory_space<vmem>>, vector<1x1x128x128xbf16>
    %6 = vector.shape_cast %5 : vector<1x1x128x128xbf16> to vector<128x128xbf16>
    %c1 = arith.constant 1 : index
    %c0_9 = arith.constant 0 : index
    %c0_10 = arith.constant 0 : index
    %7 = vector.load %arg3[%c1, %c0_9, %c0_10] : memref<2x128x128xbf16, #tpu.memory_space<vmem>>, vector<1x128x128xbf16>
    %8 = vector.shape_cast %7 : vector<1x128x128xbf16> to vector<128x128xbf16>
    %cst_11 = arith.constant dense<0.000000e+00> : vector<128x128xf32>
    %9 = tpu.matmul %6, %8, %cst_11 {dimension_numbers = #tpu.dot_dimension_numbers<[1], [0], [0], [1], [0, 0, 1, 1], [], []>} : vector<128x128xbf16>, vector<128x128xbf16>, vector<128x128xf32> -> vector<128x128xf32>
    %10 = arith.addf %4, %9 : vector<128x128xf32>
    %c0_12 = arith.constant 0 : index
    %c0_13 = arith.constant 0 : index
    %11 = vector.load %arg4[%c0_12, %c0_13] : memref<1x128xf32, #tpu.memory_space<vmem>>, vector<1x128xf32>
    %12 = vector.broadcast %11 : vector<1x128xf32> to vector<128x128xf32>
    %13 = arith.addf %10, %12 : vector<128x128xf32>
    %cst_14 = arith.constant 0.000000e+00 : f32
    %14 = vector.broadcast %cst_14 : f32 to vector<128x128xf32>
    %15 = arith.maximumf %13, %14 : vector<128x128xf32>
    %c0_15 = arith.constant 0 : index
    %c0_16 = arith.constant 0 : index
    %c0_17 = arith.constant 0 : index
    %16 = vector.load %arg5[%c0_15, %c0_16, %c0_17] : memref<1x128x128xf32, #tpu.memory_space<vmem>>, vector<1x128x128xf32>
    %17 = vector.shape_cast %16 : vector<1x128x128xf32> to vector<128x128xf32>
    %18 = vector.shape_cast %15 : vector<128x128xf32> to vector<1x128x128xf32>
    tpu.vector_store %arg5[%c0_15, %c0_16, %c0_17], %18 {strides = array<i32>} : memref<1x128x128xf32, #tpu.memory_space<vmem>>, vector<1x128x128xf32>,
    return
  }
  func.func @transform_0(%arg0: i32, %arg1: i32) -> (i32, i32, i32, i32) {
    %c0_i32 = arith.constant 0 : i32
    %c0_i32_0 = arith.constant 0 : i32
    %c0_i32_1 = arith.constant 0 : i32
    return %arg0, %arg1, %c0_i32, %c0_i32_0 : i32, i32, i32, i32
  }
  func.func @transform_1(%arg0: i32, %arg1: i32) -> (i32, i32, i32) {
    %c0_i32 = arith.constant 0 : i32
    %c0_i32_0 = arith.constant 0 : i32
    %c0_i32_1 = arith.constant 0 : i32
    %c0_i32_2 = arith.constant 0 : i32
    return %c0_i32, %c0_i32_0, %c0_i32_1 : i32, i32, i32
  }
  func.func @transform_2(%arg0: i32, %arg1: i32) -> (i32, i32) {
    %c0_i32 = arith.constant 0 : i32
    %c0_i32_0 = arith.constant 0 : i32
    %c0_i32_1 = arith.constant 0 : i32
    return %c0_i32, %c0_i32_0 : i32, i32
  }
  func.func @transform_3(%arg0: i32, %arg1: i32) -> (i32, i32, i32) {
    %c0_i32 = arith.constant 0 : i32
    %c0_i32_0 = arith.constant 0 : i32
    return %arg0, %arg1, %c0_i32 : i32, i32, i32
  }
}

</mosaic_0001>

<bundles_post_ra>
// kernel: tile.8
= control target key start
LH: loop header
LB: loop body
LE: loop exit
PB: predicated region body
PF: predicated region fallthrough
CT: control target
= control target key end

     0   :  { %s22_s0 = inlined_call_operand.vmem [shape: f32[32], index: 0, kind: input, shape index: {}]   ;;  %s23_s1 = inlined_call_operand.vmem [shape: f32[4,32], index: 1, kind: output, shape index: {}]  }
   0x1   :  { %v4_v0 = vld [vmem:[%s22_s0] ss:$0 sm:$0xff] }
   0x2   :  { %5 = vst [vmem:[%s23_s1] sm:$0xf] %v4_v0 }

// kernel: tile.9
= control target key start
LH: loop header
LB: loop body
LE: loop exit
PB: predicated region body
PF: predicated region fallthrough
CT: control target
= control target key end

     0   :  { %vm7_vm0 = vcmask 261120   ;;  %s37_s8 = smov 32   ;;  %s38_s9 = smov 64   ;;  %vm13_vm1 = vcmask 1048320   ;;  %vm19_vm2 = vcmask 785920   ;;  %vm25_vm3 = vcmask 523520   ;;  %s55_s0 = inlined_call_operand.vmem [shape: f32[4,32], index: 0, kind: input, shape index: {}]   ;;  %s56_s1 = inlined_call_operand.vmem [shape: f32[1,128], index: 1, kind: output, shape index: {}]  }
   0x1   :  { %v4_v0 = vld [vmem:[%s55_s0] sm:$0xf]  ;;  %s36_s0 = smov 96  }
   0x2   :  { %5 = vst [vmem:[#allocation1] sm:$0xf] %v4_v0 }
   0x9   :  { %v10_v1 = vld [vmem:[#allocation1 + $0x3] sm:$0x1]   ;;  %v22_v2 = vld [vmem:[#allocation1 + $0x1] sm:$0x1]   ;;  %v6_v3 = vld [vmem:[#allocation1] sm:$0x1]  }
   0xa   :  { %11 = vrot.lane.b32.xlu0 %v10_v1, %s36_s0  ;;  %23 = vrot.lane.b32.xlu1 %v22_v2, %s37_s8  ;;  %v16_v4 = vld [vmem:[#allocation1 + $0x2] sm:$0x1]   ;;  %8 = vst.msk [vmem:[#allocation0] sm:$0x1] %vm7_vm0, %v6_v3  }
   0xe   :  { %17 = vrot.lane.b32.xlu0 %v16_v4, %s38_s9 }
  0x7c   :  { %v12_v5 = vpop.permute.xlu0 %11   ;;  %v24_v6 = vpop.permute.xlu1 %23  }
  0x7d   :  { %14 = vst.msk [vmem:[#allocation0] sm:$0x1] %vm13_vm1, %v12_v5  }
  0x80   :  { %v18_v7 = vpop.permute.xlu0 %17  }
  0x81   :  { %20 = vst.msk [vmem:[#allocation0] sm:$0x1] %vm19_vm2, %v18_v7  }
  0x82   :  { %26 = vst.msk [vmem:[#allocation0] sm:$0x1] %vm25_vm3, %v24_v6  }
  0x89   :  { %v30_v8 = vld [vmem:[#allocation0] sm:$0x1] }
  0x8a   :  { %32 = vst [vmem:[%s56_s1] sm:$0x1] %v30_v8 }

// kernel: upscale_twice_forward.1
= control target key start
LH: loop header
LB: loop body
LE: loop exit
PB: predicated region body
PF: predicated region fallthrough
CT: control target
= control target key end

     0   :  { %s1114_s12 = smov 0   ;;  %s1116_s13 = smov 0   ;;  %s1279_s0 = inlined_call_operand.vmem [shape: bf16[2,2,144,128], index: 0, kind: input, shape index: {}]   ;;  %s1280_s1 = inlined_call_operand.vmem [shape: bf16[2,128,128], index: 1, kind: input, shape index: {}]   ;;  %s1281_s2 = inlined_call_operand.vmem [shape: f32[1,128], index: 2, kind: input, shape index: {}]   ;;  %s1282_s3 = inlined_call_operand.vmem [shape: f32[2,256,128], index: 3, kind: output, shape index: {}]  }
   0x1   :  { %s1118_s14 = smov 0   ;;  %s1120_s15 = smov 0  }
   0x2   :  { %s1122_s16 = smov 0  }
   0x3 LB: > { %s22_s17 = sadd.s32 1, %s1084_s14  ;;  %s25_s18 = sadd.s32 1, %s1088_s15  ;;  %s1092_s16 = sphi %s1122_s16, %s13_s16   ;;  %s1088_s15 = sphi %s1120_s15, %s1286_s15   ;;  %s1084_s14 = sphi %s1118_s14, %s1285_s14   ;;  %s1080_s13 = sphi %s1116_s13, %s1284_s13   ;;  %s1076_s12 = sphi %s1114_s12, %s1283_s12  }
   0x4   : > { %p23_p0 = scmp.ge.s32.totalorder %s22_s17, 2  ;;  %p812_p1 = scmp.ge.s32.totalorder %s1092_s16, 1 }
   0x5   : > { %p157_p2 = scmp.lt.s32.totalorder %s1092_s16, 5 }
   0x6   : > { %s1288_s17 = smov (%p23_p0, %s22_s17), 0  ;;  %s1290_s18 = smov (!%p23_p0, %s25_s18), %s1088_s15 }
   0x7   : > { %p158_p3 = pnand %p812_p1, %p157_p2  ;;  %p27_p4 = scmp.ge.s32.totalorder %s1290_s18, 2 }
   0x8   : > { %v1022_v0 = vld [vmem:[%s1280_s1 + $0x40] sm:$0xff] (!%p158_p3)   ;;  %p189_p5 = scmp.lt.s32.totalorder (!%p158_p3), %s1080_s13, 1  ;;  %p191_p6 = scmp.lt.s32.totalorder (!%p158_p3), %s1076_s12, 1  ;;  %v1024_v2 = vld [vmem:[%s1280_s1 + $0x48] sm:$0xff] (!%p158_p3)   ;;  %v1026_v4 = vld [vmem:[%s1280_s1 + $0x50] sm:$0xff] (!%p158_p3)  }
   0x9   : > { %s1292_s18 = smov (%p27_p4, %s1290_s18), 0  ;;  %161 = sbr.rel (%p158_p3) target bundleno = 289 (0x121), region = 32 }
   0xa   : > { %v1023_v1 = vld [vmem:[%s1280_s1] sm:$0xff] (!%p158_p3)   ;;  %900 = vmatprep.subr.bf16.mxu1 (!%p158_p3), %v1022_v0  ;;  %v1025_v3 = vld [vmem:[%s1280_s1 + $0x8] sm:$0xff] (!%p158_p3)   ;;  %v1027_v5 = vld [vmem:[%s1280_s1 + $0x10] sm:$0xff] (!%p158_p3)  }
   0xb   : > { %932 = vmatprep.subr.bf16.mxu0 (!%p158_p3), %v1023_v1  ;;  %901 = vmatpush3.bf16.msra.mxu1 (!%p158_p3), %v1022_v0  ;;  %v1028_v6 = vld [vmem:[%s1280_s1 + $0x58] sm:$0xff] (!%p158_p3)   ;;  %v1030_v8 = vld [vmem:[%s1280_s1 + $0x60] sm:$0xff] (!%p158_p3)   ;;  %v1032_v10 = vld [vmem:[%s1280_s1 + $0x68] sm:$0xff] (!%p158_p3)  }
   0xc   : > { %933 = vmatpush3.bf16.msra.mxu0 (!%p158_p3), %v1023_v1  ;;  %902 = vmatprep.subr.bf16.mxu1 (!%p158_p3), %v1024_v2  ;;  %v1029_v7 = vld [vmem:[%s1280_s1 + $0x18] sm:$0xff] (!%p158_p3)   ;;  %v1031_v9 = vld [vmem:[%s1280_s1 + $0x20] sm:$0xff] (!%p158_p3)   ;;  %v1033_v11 = vld [vmem:[%s1280_s1 + $0x28] sm:$0xff] (!%p158_p3)  }
   0xd   : > { %934 = vmatprep.subr.bf16.mxu0 (!%p158_p3), %v1025_v3  ;;  %v1034_v14 = vld [vmem:[%s1280_s1 + $0x70] sm:$0xff] (!%p158_p3)   ;;  %v1036_v16 = vld [vmem:[%s1280_s1 + $0x78] sm:$0xff] (!%p158_p3)   ;;  %v1225_v34 = vld [vmem:[%s1281_s2] ss:$0 sm:$0xff] (!%p158_p3) }
   0xe   : > { %v1035_v15 = vld [vmem:[%s1280_s1 + $0x30] sm:$0xff] (!%p158_p3)   ;;  %v1037_v17 = vld [vmem:[%s1280_s1 + $0x38] sm:$0xff] (!%p158_p3)  }
   0xf   : > { %903 = vmatpush3.bf16.msra.mxu1 (!%p158_p3), %v1024_v2 }
  0x10   : > { %s1294_s13 = smov (!%p189_p5, %s1080_s13), 1  ;;  %935 = vmatpush3.bf16.msra.mxu0 %v1025_v3  ;;  %904 = vmatprep.subr.bf16.mxu1 %v1026_v4 }
  0x11   : > { %s192_s27 = scalar_select %p191_p6, %s1076_s12, 1  ;;  %936 = vmatprep.subr.bf16.mxu0 %v1027_v5 }
  0x12   : > { %s981_s30 = smul.u32 36, %s1294_s13  ;;  %s815_s20 = sshll.u32 %s1294_s13, 5 }
  0x13   : > { %s980_s6 = smul.u32 18, %s192_s27  ;;  %905 = vmatpush3.bf16.msra.mxu1 %v1026_v4 }
  0x14   : > { %937 = vmatpush3.bf16.msra.mxu0 %v1027_v5  ;;  %906 = vmatprep.subr.bf16.mxu1 %v1028_v6 }
  0x15   : > { %s195_s7 = sadd.s32 %s981_s30, %s980_s6  ;;  %938 = vmatprep.subr.bf16.mxu0 %v1029_v7 }
  0x16   : > { %s813_s19 = sshll.u32 %s195_s7, 2 }
  0x17   : > { %s1184_s26 = scalar_lea.vmem %s1279_s0, %s813_s19  ;;  %907 = vmatpush3.bf16.msra.mxu1 %v1028_v6  ;;  %s814_s19 = sshll.u32 %s1076_s12, 4 }
  0x18   : > { %939 = vmatpush3.bf16.msra.mxu0 %v1029_v7  ;;  %908 = vmatprep.subr.bf16.mxu1 %v1030_v8  ;;  %v1038_v12 = vld [vmem:[%s1184_s26 + $0x8] sm:$0xff]   ;;  %v1039_v13 = vld [vmem:[%s1184_s26] sm:$0xff]   ;;  %v1040_v18 = vld [vmem:[%s1184_s26 + $0x10] sm:$0xff]   ;;  %p201_p7 = scmp.lt.s32.totalorder %s814_s19, 31 }
  0x19   : > { %940 = vmatprep.subr.bf16.mxu0 %v1031_v9  ;;  %916 = vmatprep.mubr.bf16.mxu1 %v1038_v12  ;;  %v1041_v19 = vld [vmem:[%s1184_s26 + $0x8] sm:$0xff]   ;;  %v1042_v20 = vld [vmem:[%s1184_s26 + $0x18] sm:$0xff]   ;;  %v1043_v21 = vld [vmem:[%s1184_s26 + $0x10] sm:$0xff]  }
  0x1a   : > { %948 = vmatprep.mubr.bf16.mxu0 %v1039_v13  ;;  %v1044_v22 = vld [vmem:[%s1184_s26 + $0x20] sm:$0xff]   ;;  %v1045_v23 = vld [vmem:[%s1184_s26 + $0x18] sm:$0xff]   ;;  %v1046_v24 = vld [vmem:[%s1184_s26 + $0x28] sm:$0xff]   ;;  %s1296_s19 = smov (!%p201_p7, %s814_s19), 31 }
  0x1b   : > { %909 = vmatpush3.bf16.msra.mxu1 %v1030_v8  ;;  %v1047_v25 = vld [vmem:[%s1184_s26 + $0x20] sm:$0xff]   ;;  %v1048_v26 = vld [vmem:[%s1184_s26 + $0x30] sm:$0xff]   ;;  %v1049_v27 = vld [vmem:[%s1184_s26 + $0x28] sm:$0xff]   ;;  %s204_s21 = sadd.s32 %s815_s20, %s1296_s19 }
  0x1c   : > { %941 = vmatpush3.bf16.msra.mxu0 %v1031_v9  ;;  %910 = vmatprep.subr.bf16.mxu1 %v1032_v10  ;;  %v1050_v28 = vld [vmem:[%s1184_s26 + $0x38] sm:$0xff]   ;;  %v1051_v29 = vld [vmem:[%s1184_s26 + $0x30] sm:$0xff]   ;;  %v1052_v30 = vld [vmem:[%s1184_s26 + $0x40] sm:$0xff]   ;;  %s816_s24 = sshll.u32 %s204_s21, 3 }
  0x1d   : > { %942 = vmatprep.subr.bf16.mxu0 %v1033_v11  ;;  %v1053_v31 = vld [vmem:[%s1184_s26 + $0x38] sm:$0xff]   ;;  %s1231_s25 = scalar_lea.vmem %s1282_s3, %s816_s24 }
  0x1f   : > { %911 = vmatpush3.bf16.msra.mxu1 %v1032_v10 }
  0x20   : > { %943 = vmatpush3.bf16.msra.mxu0 %v1033_v11  ;;  %912 = vmatprep.subr.bf16.mxu1 %v1034_v14 }
  0x21   : > { %944 = vmatprep.subr.bf16.mxu0 %v1035_v15 }
  0x23   : > { %913 = vmatpush3.bf16.msra.mxu1 %v1034_v14 }
  0x24   : > { %945 = vmatpush3.bf16.msra.mxu0 %v1035_v15  ;;  %914 = vmatprep.subr.bf16.mxu1 %v1036_v16 }
  0x25   : > { %946 = vmatprep.subr.bf16.mxu0 %v1037_v17 }
  0x27   : > { %915 = vmatpush3.bf16.msra.mxu1 %v1036_v16 }
  0x28   : > { %947 = vmatpush3.bf16.msra.mxu0 %v1037_v17 }
  0x2a   : > { %917 = vmatmul.mubr.bf16.vlgmr.msra.gmra.mrb[0].mxu1 %v1040_v18 }
  0x2b   : > { %949 = vmatmul.mubr.bf16.vlgmr.msra.gmra.mrb[0].mxu0 %v1041_v19  ;;  %920 = vmatprep.mubr.bf16.mxu1 %v1042_v20 }
  0x2c   : > { %952 = vmatprep.mubr.bf16.mxu0 %v1043_v21 }
  0x32   : > { %921 = vmatmul.mubr.bf16.gmra.mrb[4].mxu1 %v1044_v22 }
  0x33   : > { %953 = vmatmul.mubr.bf16.gmra.mrb[4].mxu0 %v1045_v23  ;;  %924 = vmatprep.mubr.bf16.mxu1 %v1046_v24 }
  0x34   : > { %956 = vmatprep.mubr.bf16.mxu0 %v1047_v25 }
  0x3a   : > { %925 = vmatmul.mubr.bf16.gmra.mrb[8].mxu1 %v1048_v26 }
  0x3b   : > { %957 = vmatmul.mubr.bf16.gmra.mrb[8].mxu0 %v1049_v27  ;;  %928 = vmatprep.mubr.bf16.mxu1 %v1050_v28 }
  0x3c   : > { %960 = vmatprep.mubr.bf16.mxu0 %v1051_v29 }
  0x42   : > { %929 = vmatmul.mubr.bf16.gmra.mrb[12].mxu1 %v1052_v30 }
  0x43   : > { %961 = vmatmul.mubr.bf16.gmra.mrb[12].mxu0 %v1053_v31 }
  0xfd   : > { %v918_v32 = vpop.f32.mrb[0].mxu1 }
  0xfe   : > { %v950_v33 = vpop.f32.mrb[0].mxu0  ;;  %v404_v35 = vpop.f32.mrb[1].mxu1 }
  0xff   : > { %v606_v36 = vadd.f32 %v950_v33, %v918_v32  ;;  %v597_v37 = vpop.f32.mrb[1].mxu0  ;;  %v919_v38 = vpop.f32.mrb[2].mxu1 }
 0x100   : > { %v598_v39 = vadd.f32 %v597_v37, %v404_v35  ;;  %v951_v40 = vpop.f32.mrb[2].mxu0  ;;  %v407_v41 = vpop.f32.mrb[3].mxu1 }
 0x101   : > { %v669_v42 = vadd.f32 %v1225_v34, %v606_v36  ;;  %v609_v43 = vadd.f32 %v951_v40, %v919_v38  ;;  %v600_v44 = vpop.f32.mrb[3].mxu0 }
 0x102   : > { %v667_v45 = vadd.f32 %v1225_v34, %v598_v39  ;;  %v601_v46 = vadd.f32 %v600_v44, %v407_v41 }
 0x103   : > { %v685_v47 = vmax.f32 %v669_v42, 0.0  ;;  %v670_v48 = vadd.f32 %v1225_v34, %v609_v43 }
 0x104   : > { %v683_v49 = vmax.f32 %v667_v45, 0.0  ;;  %v668_v50 = vadd.f32 %v1225_v34, %v601_v46 }
 0x105   : > { %701 = vst [vmem:[%s1231_s25 + $0x10] sm:$0xff] %v685_v47  ;;  %v686_v51 = vmax.f32 %v670_v48, 0.0  ;;  %v922_v52 = vpop.f32.mrb[4].mxu1 }
 0x106   : > { %699 = vst [vmem:[%s1231_s25] sm:$0xff] %v683_v49  ;;  %v684_v53 = vmax.f32 %v668_v50, 0.0  ;;  %v954_v54 = vpop.f32.mrb[4].mxu0  ;;  %v420_v55 = vpop.f32.mrb[5].mxu1 }
 0x107   : > { %702 = vst [vmem:[%s1231_s25 + $0x18] sm:$0xff] %v686_v51  ;;  %v622_v56 = vadd.f32 %v954_v54, %v922_v52  ;;  %v613_v57 = vpop.f32.mrb[5].mxu0  ;;  %v923_v58 = vpop.f32.mrb[6].mxu1 }
 0x108   : > { %700 = vst [vmem:[%s1231_s25 + $0x8] sm:$0xff] %v684_v53  ;;  %v614_v59 = vadd.f32 %v613_v57, %v420_v55  ;;  %v955_v60 = vpop.f32.mrb[6].mxu0  ;;  %v423_v61 = vpop.f32.mrb[7].mxu1 }
 0x109   : > { %v673_v62 = vadd.f32 %v1225_v34, %v622_v56  ;;  %v625_v63 = vadd.f32 %v955_v60, %v923_v58  ;;  %v616_v0 = vpop.f32.mrb[7].mxu0 }
 0x10a   : > { %v671_v1 = vadd.f32 %v1225_v34, %v614_v59  ;;  %v617_v2 = vadd.f32 %v616_v0, %v423_v61 }
 0x10b   : > { %v689_v3 = vmax.f32 %v673_v62, 0.0  ;;  %v674_v4 = vadd.f32 %v1225_v34, %v625_v63 }
 0x10c   : > { %v687_v5 = vmax.f32 %v671_v1, 0.0  ;;  %v672_v6 = vadd.f32 %v1225_v34, %v617_v2 }
 0x10d   : > { %705 = vst [vmem:[%s1231_s25 + $0x30] sm:$0xff] %v689_v3  ;;  %v690_v7 = vmax.f32 %v674_v4, 0.0  ;;  %v926_v8 = vpop.f32.mrb[8].mxu1 }
 0x10e   : > { %703 = vst [vmem:[%s1231_s25 + $0x20] sm:$0xff] %v687_v5  ;;  %v688_v9 = vmax.f32 %v672_v6, 0.0  ;;  %v958_v10 = vpop.f32.mrb[8].mxu0  ;;  %v436_v11 = vpop.f32.mrb[9].mxu1 }
 0x10f   : > { %706 = vst [vmem:[%s1231_s25 + $0x38] sm:$0xff] %v690_v7  ;;  %v638_v12 = vadd.f32 %v958_v10, %v926_v8  ;;  %v629_v13 = vpop.f32.mrb[9].mxu0  ;;  %v927_v14 = vpop.f32.mrb[10].mxu1 }
 0x110   : > { %704 = vst [vmem:[%s1231_s25 + $0x28] sm:$0xff] %v688_v9  ;;  %v630_v15 = vadd.f32 %v629_v13, %v436_v11  ;;  %v959_v16 = vpop.f32.mrb[10].mxu0  ;;  %v439_v17 = vpop.f32.mrb[11].mxu1 }
 0x111   : > { %v677_v18 = vadd.f32 %v1225_v34, %v638_v12  ;;  %v641_v19 = vadd.f32 %v959_v16, %v927_v14  ;;  %v632_v20 = vpop.f32.mrb[11].mxu0 }
 0x112   : > { %v675_v21 = vadd.f32 %v1225_v34, %v630_v15  ;;  %v633_v22 = vadd.f32 %v632_v20, %v439_v17 }
 0x113   : > { %v693_v23 = vmax.f32 %v677_v18, 0.0  ;;  %v678_v24 = vadd.f32 %v1225_v34, %v641_v19 }
 0x114   : > { %v691_v25 = vmax.f32 %v675_v21, 0.0  ;;  %v676_v26 = vadd.f32 %v1225_v34, %v633_v22 }
 0x115   : > { %709 = vst [vmem:[%s1231_s25 + $0x50] sm:$0xff] %v693_v23  ;;  %v694_v27 = vmax.f32 %v678_v24, 0.0  ;;  %v930_v28 = vpop.f32.mrb[12].mxu1 }
 0x116   : > { %707 = vst [vmem:[%s1231_s25 + $0x40] sm:$0xff] %v691_v25  ;;  %v692_v29 = vmax.f32 %v676_v26, 0.0  ;;  %v962_v30 = vpop.f32.mrb[12].mxu0  ;;  %v452_v31 = vpop.f32.mrb[13].mxu1 }
 0x117   : > { %710 = vst [vmem:[%s1231_s25 + $0x58] sm:$0xff] %v694_v27  ;;  %v654_v32 = vadd.f32 %v962_v30, %v930_v28  ;;  %v645_v33 = vpop.f32.mrb[13].mxu0  ;;  %v931_v35 = vpop.f32.mrb[14].mxu1 }
 0x118   : > { %708 = vst [vmem:[%s1231_s25 + $0x48] sm:$0xff] %v692_v29  ;;  %v646_v36 = vadd.f32 %v645_v33, %v452_v31  ;;  %v963_v37 = vpop.f32.mrb[14].mxu0  ;;  %v455_v38 = vpop.f32.mrb[15].mxu1 }
 0x119   : > { %v681_v39 = vadd.f32 %v1225_v34, %v654_v32  ;;  %v657_v40 = vadd.f32 %v963_v37, %v931_v35  ;;  %v648_v41 = vpop.f32.mrb[15].mxu0 }
 0x11a   : > { %v679_v42 = vadd.f32 %v1225_v34, %v646_v36  ;;  %v649_v43 = vadd.f32 %v648_v41, %v455_v38 }
 0x11b   : > { %v697_v44 = vmax.f32 %v681_v39, 0.0  ;;  %v682_v45 = vadd.f32 %v1225_v34, %v657_v40 }
 0x11c   : > { %v695_v46 = vmax.f32 %v679_v42, 0.0  ;;  %v680_v47 = vadd.f32 %v1225_v34, %v649_v43 }
 0x11d   : > { %713 = vst [vmem:[%s1231_s25 + $0x70] sm:$0xff] %v697_v44  ;;  %v698_v48 = vmax.f32 %v682_v45, 0.0 }
 0x11e   : > { %711 = vst [vmem:[%s1231_s25 + $0x60] sm:$0xff] %v695_v46  ;;  %v696_v49 = vmax.f32 %v680_v47, 0.0 }
 0x11f   : > { %714 = vst [vmem:[%s1231_s25 + $0x78] sm:$0xff] %v698_v48 }
 0x120   : > { %712 = vst [vmem:[%s1231_s25 + $0x68] sm:$0xff] %v696_v49 }
 0x121 PF: > { %s13_s16 = sadd.s32 1, %s1092_s16   ;;  %s1283_s12 = smov %s1084_s14 }
 0x122   : > { %p10_p8 = scmp.ge.s32.totalorder %s13_s16, 6   ;;  %s1284_s13 = smov %s1088_s15 }
 0x123   : > { %s1285_s14 = smov %s1288_s17  ;;  %s1286_s15 = smov %s1292_s18 }
 0x124   :  { %12 = sbr.rel (!%p10_p8) target bundleno = 3 (0x3), region = 63 }

</bundles_post_ra>
